<compile_context>
chip_gen: v7x
topology: tpu7x:2x2x1
jax: 0.10.0
libtpu: 0.0.40
codegen_flags: <defaults>
</compile_context>

<pallas_src>
import functools
import math

import jax
import jax.numpy as jnp
from jax.experimental import pallas as pl
from jax.experimental.pallas import tpu as pltpu

PRED_MIN = 1e-5                      # torch.clamp(pred, min=1e-5, max=1)
_LOG_PRED_MIN = math.log(PRED_MIN)


def _anorm_kernel(pred_ref, labels_ref, out_ref, *,
                  n_valid, tile_cols, tiles_per_chunk, a, p, mask_pad):
    c = pl.program_id(0)          # chunk (parallel axis -> v7x 2 TCs)
    t = pl.program_id(1)          # tile within chunk (sequential reduction)

    @pl.when(t == 0)
    def _init():
        out_ref[...] = jnp.zeros_like(out_ref)

    x = pred_ref[...].astype(jnp.float32)        # (C, TC): classes on sublanes
    lab = labels_ref[...]                        # (1, TC) int32
    nc, tc = x.shape

    # clamped log-softmax over the class (sublane) axis:
    #   log q = clip(x - max - log(sum exp), log(1e-5), 0)
    m = jnp.max(x, axis=0, keepdims=True)                      # (1, TC)
    xs = x - m
    denom = jnp.sum(jnp.exp(xs), axis=0, keepdims=True)        # (1, TC)
    logq = jnp.clip(xs - jnp.log(denom), _LOG_PRED_MIN, 0.0)   # (C, TC)

    # q^p for every class via one exp/element (no explicit softmax divide)
    qpow = jnp.exp(p * logq)                                   # (C, TC)
    col_pow_sum = jnp.sum(qpow, axis=0, keepdims=True)         # (1, TC)

    # label row, extracted with exact masked sums (reuse logq and qpow)
    iota_c = jax.lax.broadcasted_iota(jnp.int32, (nc, tc), 0)
    is_label = iota_c == lab
    logq_lab = jnp.sum(jnp.where(is_label, logq, 0.0), axis=0, keepdims=True)
    qpow_lab = jnp.sum(jnp.where(is_label, qpow, 0.0), axis=0, keepdims=True)
    q_lab = jnp.exp(logq_lab)
    # |a*1 - q_label|^p ; clamp to avoid log(0) when a == q_label
    lab_term = jnp.exp(p * jnp.log(jnp.maximum(jnp.abs(a - q_lab), 1e-30)))

    # sum_c |a*onehot_c - q_c|^p = sum_c q_c^p - q_label^p + |a - q_label|^p
    loss_col = col_pow_sum - qpow_lab + lab_term               # (1, TC)

    if mask_pad:  # only emitted when the batch was actually padded
        gtile = c * tiles_per_chunk + t
        col_ids = gtile * tile_cols + jax.lax.broadcasted_iota(
            jnp.int32, (1, tc), 1)
        loss_col = jnp.where(col_ids < n_valid, loss_col, 0.0)

    # lane-dense elementwise accumulation into the resident per-chunk block
    out_ref[...] += loss_col[None]


def _round_up(x, m):
    return ((x + m - 1) // m) * m


def anorm_loss(pred, labels, num_classes=10, a=1.5, p=0.9, scale=1.0,
               tile_cols=None, max_chunks=2):
    """pred: (N, C) logits (any float dtype); labels: (N,) int class indices."""
    N, C = pred.shape
    assert C == num_classes

    # batch -> lanes (last dim), classes -> sublanes
    pred_t = jnp.transpose(pred)                      # (C, N)
    labels2d = labels.reshape(1, N).astype(jnp.int32)

    if tile_cols is None:
        # large lane-dense tiles amortize per-grid-step overhead; lane-padded
        # footprint (C->16 sublanes f32 + int32 labels, double-buffered) stays
        # a few MiB even at 16384, well inside v7x's 64 MiB VMEM.
        tile_cols = min(_round_up(N, 128), 16384)
    tile_cols = max(128, _round_up(int(tile_cols), 128))

    total_tiles = pl.cdiv(N, tile_cols)
    num_chunks = max(1, min(int(max_chunks), total_tiles))   # v7x: 2 TCs
    tiles_per_chunk = pl.cdiv(total_tiles, num_chunks)
    total_tiles = num_chunks * tiles_per_chunk
    n_pad = total_tiles * tile_cols
    if n_pad != N:
        pred_t = jnp.pad(pred_t, ((0, 0), (0, n_pad - N)))
        labels2d = jnp.pad(labels2d, ((0, 0), (0, n_pad - N)))

    kernel = functools.partial(
        _anorm_kernel, n_valid=N, tile_cols=tile_cols,
        tiles_per_chunk=tiles_per_chunk, a=float(a), p=float(p),
        mask_pad=(n_pad != N))

    partials = pl.pallas_call(
        kernel,
        out_shape=jax.ShapeDtypeStruct((num_chunks, 1, tile_cols), jnp.float32),
        grid=(num_chunks, tiles_per_chunk),
        in_specs=[
            # pred tile (C, TC), native dtype, upcast in-kernel
            pl.BlockSpec((C, tile_cols),
                         lambda c, t: (0, c * tiles_per_chunk + t)),
            # labels tile (1, TC)
            pl.BlockSpec((1, tile_cols),
                         lambda c, t: (0, c * tiles_per_chunk + t)),
        ],
        # one resident lane-dense partial-sum block per chunk
        out_specs=pl.BlockSpec((1, 1, tile_cols), lambda c, t: (c, 0, 0)),
        compiler_params=pltpu.CompilerParams(
            dimension_semantics=("parallel", "arbitrary"),
            vmem_limit_bytes=32 * 1024 * 1024,
        ),
    )(pred_t, labels2d)

    # finalize in the wrapper (safe under the parallel chunk axis)
    total = jnp.sum(partials)
    return (total / N - (a - 1.0) ** p) * (scale / p)


def anorm_loss_ref(pred, labels, num_classes=10, a=1.5, p=0.9, scale=1.0):
    """Pure-JAX reference matching the PyTorch ANormLoss forward."""
    q = jax.nn.softmax(pred.astype(jnp.float32), axis=1)
    q = jnp.clip(q, PRED_MIN, 1.0)
    oh = jax.nn.one_hot(labels, num_classes, dtype=jnp.float32)
    loss = jnp.sum(jnp.abs(a * oh - q) ** p, axis=1) - (a - 1.0) ** p
    return jnp.mean(loss) * scale / p


if __name__ == "__main__":
    key = jax.random.PRNGKey(0)
    k1, k2, k3, k4, k5, k6 = jax.random.split(key, 6)
    C = 10                      # num_classes (module default)
    a, p, scale = 1.5, 0.9, 1.0

    # 1) f32, ragged small batch (13 rows -> single padded/masked 128-lane tile)
    pred1 = jax.random.normal(k1, (13, C), dtype=jnp.float32)
    lab1 = jax.random.randint(k2, (13,), 0, C, dtype=jnp.int32)
    out1 = jax.block_until_ready(anorm_loss(pred1, lab1, C, a, p, scale))
    ref1 = anorm_loss_ref(pred1, lab1, C, a, p, scale)
    assert jnp.allclose(out1, ref1, rtol=1e-4, atol=1e-5), (out1, ref1)

    # 2) f32, multi-tile + 2 parallel chunks + ragged padding spanning tiles
    pred2 = jax.random.normal(k3, (300, C), dtype=jnp.float32)
    lab2 = jax.random.randint(k4, (300,), 0, C, dtype=jnp.int32)
    out2 = jax.block_until_ready(
        anorm_loss(pred2, lab2, C, a, p, scale, tile_cols=128, max_chunks=2))
    ref2 = anorm_loss_ref(pred2, lab2, C, a, p, scale)
    assert jnp.allclose(out2, ref2, rtol=1e-4, atol=1e-5), (out2, ref2)

    # 3) bf16 logits passed in native dtype (upcast happens per-tile in kernel)
    pred3 = jax.random.normal(k5, (64, C), dtype=jnp.float32).astype(jnp.bfloat16)
    lab3 = jax.random.randint(k6, (64,), 0, C, dtype=jnp.int32)
    out3 = jax.block_until_ready(anorm_loss(pred3, lab3, C, a, p, scale))
    ref3 = anorm_loss_ref(pred3, lab3, C, a, p, scale)
    assert jnp.allclose(out3, ref3, rtol=1e-4, atol=1e-5), (out3, ref3)

    print("KERNEL_OK")
</pallas_src>

<mosaic_0001>
module attributes {stable_mosaic.version = 11 : i64} {
  func.func @_anorm_kernel(%arg0: i32, %arg1: i32, %arg2: memref<10x128xf32, #tpu.memory_space<vmem>>, %arg3: memref<1x128xi32, #tpu.memory_space<vmem>>, %arg4: memref<1x1x128xf32, #tpu.memory_space<vmem>>) attributes {dimension_semantics = [#tpu.dimension_semantics<parallel>, #tpu.dimension_semantics<arbitrary>], iteration_bounds = array<i64: 1, 1>, scalar_prefetch = 0 : i64, scratch_operands = 0 : i64, tpu.core_type = #tpu.core_type<tc>, window_params = [{transform_indices = @transform_0, window_bounds = array<i64: 10, 128>}, {transform_indices = @transform_1, window_bounds = array<i64: 1, 128>}, {transform_indices = @transform_2, window_bounds = array<i64: 1, 1, 128>}]} {
    %c0_i32 = arith.constant 0 : i32
    %0 = arith.cmpi eq, %arg1, %c0_i32 : i32
    %1 = arith.extui %0 : i1 to i32
    %c0_i32_0 = arith.constant 0 : i32
    %2 = arith.cmpi ne, %1, %c0_i32_0 : i32
    scf.if %2 {
      %cst_23 = arith.constant 0.000000e+00 : f32
      %61 = vector.broadcast %cst_23 : f32 to vector<1x1x128xf32>
      %c0_24 = arith.constant 0 : index
      %c0_25 = arith.constant 0 : index
      %c0_26 = arith.constant 0 : index
      %62 = vector.load %arg4[%c0_24, %c0_25, %c0_26] : memref<1x1x128xf32, #tpu.memory_space<vmem>>, vector<1x1x128xf32>
      tpu.vector_store %arg4[%c0_24, %c0_25, %c0_26], %61 {strides = array<i32>} : memref<1x1x128xf32, #tpu.memory_space<vmem>>, vector<1x1x128xf32>,
    } else {
    }
    %c0 = arith.constant 0 : index
    %c0_1 = arith.constant 0 : index
    %3 = vector.load %arg2[%c0, %c0_1] : memref<10x128xf32, #tpu.memory_space<vmem>>, vector<10x128xf32>
    %c0_2 = arith.constant 0 : index
    %c0_3 = arith.constant 0 : index
    %4 = vector.load %arg3[%c0_2, %c0_3] : memref<1x128xi32, #tpu.memory_space<vmem>>, vector<1x128xi32>
    %cst = arith.constant dense<0xFF800000> : vector<128xf32>
    %5 = vector.multi_reduction <maximumf>, %3, %cst [0] : vector<10x128xf32> to vector<128xf32>
    %6 = vector.shape_cast %5 : vector<128xf32> to vector<1x128xf32>
    %7 = vector.broadcast %6 : vector<1x128xf32> to vector<10x128xf32>
    %8 = arith.subf %3, %7 : vector<10x128xf32>
    %9 = math.exp %8 : vector<10x128xf32>
    %cst_4 = arith.constant dense<0.000000e+00> : vector<128xf32>
    %10 = vector.multi_reduction <add>, %9, %cst_4 [0] : vector<10x128xf32> to vector<128xf32>
    %11 = vector.shape_cast %10 : vector<128xf32> to vector<1x128xf32>
    %12 = math.log %11 : vector<1x128xf32>
    %13 = vector.broadcast %12 : vector<1x128xf32> to vector<10x128xf32>
    %14 = arith.subf %8, %13 : vector<10x128xf32>
    %cst_5 = arith.constant -11.5129251 : f32
    %cst_6 = arith.constant 0.000000e+00 : f32
    %15 = vector.broadcast %cst_5 : f32 to vector<10x128xf32>
    %16 = arith.maximumf %15, %14 : vector<10x128xf32>
    %17 = vector.broadcast %cst_6 : f32 to vector<10x128xf32>
    %18 = arith.minimumf %17, %16 : vector<10x128xf32>
    %cst_7 = arith.constant 0.899999976 : f32
    %19 = vector.broadcast %cst_7 : f32 to vector<10x128xf32>
    %20 = arith.mulf %19, %18 : vector<10x128xf32>
    %21 = math.exp %20 : vector<10x128xf32>
    %cst_8 = arith.constant dense<0.000000e+00> : vector<128xf32>
    %22 = vector.multi_reduction <add>, %21, %cst_8 [0] : vector<10x128xf32> to vector<128xf32>
    %23 = vector.shape_cast %22 : vector<128xf32> to vector<1x128xf32>
    %24 = tpu.iota {dimensions = array<i32: 0>} : vector<10x128xi32>
    %25 = vector.broadcast %4 : vector<1x128xi32> to vector<10x128xi32>
    %26 = arith.cmpi eq, %24, %25 : vector<10x128xi32>
    %cst_9 = arith.constant 0.000000e+00 : f32
    %27 = vector.broadcast %cst_9 : f32 to vector<10x128xf32>
    %28 = arith.select %26, %18, %27 : vector<10x128xi1>, vector<10x128xf32>
    %cst_10 = arith.constant dense<0.000000e+00> : vector<128xf32>
    %29 = vector.multi_reduction <add>, %28, %cst_10 [0] : vector<10x128xf32> to vector<128xf32>
    %30 = vector.shape_cast %29 : vector<128xf32> to vector<1x128xf32>
    %cst_11 = arith.constant 0.000000e+00 : f32
    %31 = vector.broadcast %cst_11 : f32 to vector<10x128xf32>
    %32 = arith.select %26, %21, %31 : vector<10x128xi1>, vector<10x128xf32>
    %cst_12 = arith.constant dense<0.000000e+00> : vector<128xf32>
    %33 = vector.multi_reduction <add>, %32, %cst_12 [0] : vector<10x128xf32> to vector<128xf32>
    %34 = vector.shape_cast %33 : vector<128xf32> to vector<1x128xf32>
    %35 = math.exp %30 : vector<1x128xf32>
    %cst_13 = arith.constant 1.500000e+00 : f32
    %36 = vector.broadcast %cst_13 : f32 to vector<1x128xf32>
    %37 = arith.subf %36, %35 : vector<1x128xf32>
    %38 = math.absf %37 : vector<1x128xf32>
    %cst_14 = arith.constant 1.000000e-30 : f32
    %39 = vector.broadcast %cst_14 : f32 to vector<1x128xf32>
    %40 = arith.maximumf %38, %39 : vector<1x128xf32>
    %41 = math.log %40 : vector<1x128xf32>
    %cst_15 = arith.constant 0.899999976 : f32
    %42 = vector.broadcast %cst_15 : f32 to vector<1x128xf32>
    %43 = arith.mulf %42, %41 : vector<1x128xf32>
    %44 = math.exp %43 : vector<1x128xf32>
    %45 = arith.subf %23, %34 : vector<1x128xf32>
    %46 = arith.addf %45, %44 : vector<1x128xf32>
    %c1_i32 = arith.constant 1 : i32
    %47 = arith.muli %arg0, %c1_i32 : i32
    %48 = arith.addi %47, %arg1 : i32
    %c128_i32 = arith.constant 128 : i32
    %49 = arith.muli %48, %c128_i32 : i32
    %50 = tpu.iota {dimensions = array<i32: 1>} : vector<1x128xi32>
    %51 = vector.broadcast %49 : i32 to vector<1x128xi32>
    %52 = arith.addi %51, %50 : vector<1x128xi32>
    %c13_i32 = arith.constant 13 : i32
    %53 = vector.broadcast %c13_i32 : i32 to vector<1x128xi32>
    %54 = arith.cmpi slt, %52, %53 : vector<1x128xi32>
    %cst_16 = arith.constant 0.000000e+00 : f32
    %55 = vector.broadcast %cst_16 : f32 to vector<1x128xf32>
    %56 = arith.select %54, %46, %55 : vector<1x128xi1>, vector<1x128xf32>
    %c0_17 = arith.constant 0 : index
    %c0_18 = arith.constant 0 : index
    %c0_19 = arith.constant 0 : index
    %57 = vector.load %arg4[%c0_17, %c0_18, %c0_19] : memref<1x1x128xf32, #tpu.memory_space<vmem>>, vector<1x1x128xf32>
    %58 = vector.shape_cast %56 : vector<1x128xf32> to vector<1x1x128xf32>
    %59 = arith.addf %57, %58 : vector<1x1x128xf32>
    %c0_20 = arith.constant 0 : index
    %c0_21 = arith.constant 0 : index
    %c0_22 = arith.constant 0 : index
    %60 = vector.load %arg4[%c0_20, %c0_21, %c0_22] : memref<1x1x128xf32, #tpu.memory_space<vmem>>, vector<1x1x128xf32>
    tpu.vector_store %arg4[%c0_20, %c0_21, %c0_22], %59 {strides = array<i32>} : memref<1x1x128xf32, #tpu.memory_space<vmem>>, vector<1x1x128xf32>,
    return
  }
  func.func @transform_0(%arg0: i32, %arg1: i32) -> (i32, i32) {
    %c1_i32 = arith.constant 1 : i32
    %0 = arith.muli %arg0, %c1_i32 : i32
    %1 = arith.addi %0, %arg1 : i32
    %c0_i32 = arith.constant 0 : i32
    %c0_i32_0 = arith.constant 0 : i32
    return %c0_i32, %1 : i32, i32
  }
  func.func @transform_1(%arg0: i32, %arg1: i32) -> (i32, i32) {
    %c1_i32 = arith.constant 1 : i32
    %0 = arith.muli %arg0, %c1_i32 : i32
    %1 = arith.addi %0, %arg1 : i32
    %c0_i32 = arith.constant 0 : i32
    %c0_i32_0 = arith.constant 0 : i32
    return %c0_i32, %1 : i32, i32
  }
  func.func @transform_2(%arg0: i32, %arg1: i32) -> (i32, i32, i32) {
    %c0_i32 = arith.constant 0 : i32
    %c0_i32_0 = arith.constant 0 : i32
    %c0_i32_1 = arith.constant 0 : i32
    return %arg0, %c0_i32, %c0_i32_0 : i32, i32, i32
  }
}

</mosaic_0001>

<bundles_post_ra>
// kernel: tpu_custom_call.1
= control target key start
LH: loop header
LB: loop body
LE: loop exit
PB: predicated region body
PF: predicated region fallthrough
CT: control target
= control target key end

     0   :  { %7 = vsyncpa [#allocation3], 0  ;;  %s293_s0 = inlined_call_operand.hbm [shape: f32[10,128], index: 0, kind: input, shape index: {}]   ;;  %s294_s1 = inlined_call_operand.vmem [shape: s32[1,128], index: 1, kind: input, shape index: {}]   ;;  %s295_s2 = inlined_call_operand.hbm [shape: f32[1,1,128], index: 2, kind: output, shape index: {}]  }
   0x1   :  { %8 = vsyncpa [#allocation4], 0  ;;  %s237_s9 = smov [#allocation2]   ;;  %s189_s13 = scalar_lea.hbm %s293_s0, 256 }
   0x2   :  { %s17_s10 = sshll.u32 %s237_s9, 4  ;;  %p190_p0 = scmp.ne.s32.totalorder %s293_s0, %s189_s13  ;;  %s18_s10 = int_to_ptr.vmem [resolvable:$true] %s17_s10 }
   0x3   :  { %p193_p1 = scmp.lt.u32.totalorder %s189_s13, %s293_s0 }
   0x5   :  { %p195_p2 = pnand %p193_p1, %p190_p0 }
   0x7   :  { %198 = shalt.err (!%p195_p2)
}
   0x8   :  { %s199_s18 = scalar_lea.vmem %s18_s10, 256  ;;  %p204_p4 = scmp.lt.s32.totalorder %s18_s10, %s18_s10 }
   0x9   :  { %p200_p3 = scmp.ne.s32.totalorder %s18_s10, %s199_s18  ;;  %p205_p5 = scmp.lt.s32.totalorder %s199_s18, %s199_s18 }
   0xb   :  { %p206_p6 = por %p205_p5, %p204_p4 }
   0xd   :  { %p207_p7 = pnand %p206_p6, %p200_p3 }
   0xf   :  { %210 = shalt.err (!%p207_p7)
}
  0x10   :  { %s238_s19 = smov 128   ;;  %s239_s20 = smov 8  }
  0x11   :  { %23 = dma.hbm_to_vmem [thread:$0]  %s293_s0, 256, %s18_s10, [#allocation3], %s238_s19, %s238_s19, %s239_s20  }
  0x12   :  { %233 = dma.done.wait [#allocation3], 256  }
  0x13   :  { %234 = vsyncadd [#allocation3], 4294967040  ;;  %v240_v0 = vmov 0.0   ;;  %vm52_vm0 = vcmask 1041408   ;;  %v49_v1 = vld [vmem:[#allocation2] sm:$0xff]  ;;  %v97_v25 = vlaneseq }
  0x14   :  { %48 = vst [vmem:[#allocation5] sm:$0x1] %v240_v0  ;;  %v50_v2 = vld [vmem:[#allocation2 + $0x8] sm:$0x3]  ;;  %v167_v30 = vld [vmem:[%s294_s1] ss:$0 sm:$0xff] }
  0x15   :  { %v53_v3 = vsel %vm52_vm0, %v50_v2, -inf  ;;  %v98_v26 = vshrl.u32 %v97_v25, 7  ;;  %s241_s1 = smov [#allocation5]  }
  0x16   :  { %v54_v4 = vmax.f32 %v49_v1, %v53_v3  ;;  %s155_s24 = sshll.u32 %s241_s1, 4  ;;  %s156_s24 = int_to_ptr.vmem [resolvable:$true] %s155_s24 }
  0x17   :  { %v99_v29 = vadd.s32 8, %v98_v26  ;;  %vm104_vm1 = vcmp.eq.s32.totalorder %v98_v26, %v167_v30  ;;  %s211_s25 = scalar_lea.vmem %s156_s24, 16  ;;  %s215_s26 = scalar_lea.vmem %s156_s24, 32 }
  0x18   :  { %v55_v5 = vrot.slane %v54_v4, 4  ;;  %p212_p8 = scmp.ne.s32.totalorder %s156_s24, %s211_s25  ;;  %p216_p9 = scmp.lt.s32.totalorder %s156_s24, %s156_s24 }
  0x19   :  { %vm105_vm2 = vcmp.eq.s32.totalorder %v99_v29, %v167_v30  ;;  %p217_p10 = scmp.lt.s32.totalorder %s215_s26, %s211_s25 }
  0x1a   :  { %v56_v6 = vmax.f32 %v54_v4, %v55_v5 }
  0x1b   :  { %p218_p11 = por %p217_p10, %p216_p9 }
  0x1c   :  { %v57_v7 = vrot.slane %v56_v6, 2 }
  0x1d   :  { %p219_p12 = pnand %p218_p11, %p212_p8 }
  0x1e   :  { %v58_v8 = vmax.f32 %v56_v6, %v57_v7 }
  0x20   :  { %v59_v9 = vrot.slane %v58_v8, 1 }
  0x22   :  { %v60_v10 = vmax.f32 %v58_v8, %v59_v9 }
  0x24   :  { %v61_v11 = vsub.f32 %v49_v1, %v60_v10  ;;  %v62_v12 = vsub.f32 %v50_v2, %v60_v10 }
  0x26   :  { %v63_v13 = vmul.f32 1.442695, %v61_v11  ;;  %v65_v14 = vmul.f32 1.442695, %v62_v12 }
  0x28   :  { %173 = vpow2.f32 %v63_v13 }
  0x29   :  { %175 = vpow2.f32 %v65_v14 }
  0x32   :  { %v174_v15 = vpop.eup %173 }
  0x33   :  { %v176_v16 = vpop.eup %175 }
  0x34   :  { %v67_v17 = vsel %vm52_vm0, %v176_v16, 0.0  ;;  %v141_v16 = vand.u32 127, %v97_v25 }
  0x35   :  { %v68_v18 = vadd.f32 %v174_v15, %v67_v17 }
  0x36   :  { %vm144_vm3 = vcmp.lt.s32.totalorder %v141_v16, 13 }
  0x37   :  { %v69_v19 = vrot.slane %v68_v18, 4 }
  0x39   :  { %v70_v20 = vadd.f32 %v69_v19, %v68_v18 }
  0x3b   :  { %v71_v21 = vrot.slane %v70_v20, 2 }
  0x3d   :  { %v72_v22 = vadd.f32 %v71_v21, %v70_v20  ;;  %v146_v20 = vld [vmem:[#allocation5] sm:$0x1] }
  0x3f   :  { %v73_v23 = vrot.slane %v72_v22, 1 }
  0x41   :  { %v74_v24 = vadd.f32 %v73_v23, %v72_v22 }
  0x43   :  { %177 = vlog2.f32 %v74_v24 }
  0x4d   :  { %v178_v27 = vpop.eup %177 }
  0x4e   :  { %v76_v28 = vmul.f32 0.6931472, %v178_v27 }
  0x50   :  { %v77_v31 = vsub.f32 %v61_v11, %v76_v28  ;;  %v78_v32 = vsub.f32 %v62_v12, %v76_v28 }
  0x52   :  { %v79_v33 = vmax.f32 %v77_v31, -11.512925  ;;  %v80_v34 = vmax.f32 %v78_v32, -11.512925 }
  0x54   :  { %v81_v35 = vmin.f32 %v79_v33, 0.0  ;;  %v82_v36 = vmin.f32 %v80_v34, 0.0 }
  0x56   :  { %v106_v37 = vsel %vm104_vm1, %v81_v35, 0.0  ;;  %v107_v38 = vsel %vm105_vm2, %v82_v36, 0.0  ;;  %v84_v41 = vmul.f32 0.9, %v82_v36  ;;  %v83_v44 = vmul.f32 0.9, %v81_v35 }
  0x57   :  { %v108_v39 = vsel %vm52_vm0, %v107_v38, 0.0 }
  0x58   :  { %v109_v40 = vadd.f32 %v108_v39, %v106_v37  ;;  %v87_v45 = vmul.f32 1.442695, %v84_v41  ;;  %v85_v48 = vmul.f32 1.442695, %v83_v44 }
  0x5a   :  { %v110_v42 = vrot.slane %v109_v40, 4  ;;  %179 = vpow2.f32 %v87_v45 }
  0x5b   :  { %181 = vpow2.f32 %v85_v48 }
  0x5c   :  { %v111_v43 = vadd.f32 %v110_v42, %v109_v40 }
  0x5e   :  { %v112_v46 = vrot.slane %v111_v43, 2 }
  0x60   :  { %v113_v47 = vadd.f32 %v112_v46, %v111_v43 }
  0x62   :  { %v114_v49 = vrot.slane %v113_v47, 1 }
  0x64   :  { %v115_v50 = vadd.f32 %v114_v49, %v113_v47  ;;  %v180_v52 = vpop.eup %179 }
  0x65   :  { %v182_v53 = vpop.eup %181  ;;  %v117_v54 = vsel %vm105_vm2, %v180_v52, 0.0  ;;  %v89_v56 = vsel %vm52_vm0, %v180_v52, 0.0 }
  0x66   :  { %v126_v51 = vmul.f32 1.442695, %v115_v50  ;;  %v116_v57 = vsel %vm104_vm1, %v182_v53, 0.0  ;;  %v118_v58 = vsel %vm52_vm0, %v117_v54, 0.0  ;;  %v90_v60 = vadd.f32 %v182_v53, %v89_v56 }
  0x67   :  { %v119_v61 = vadd.f32 %v118_v58, %v116_v57 }
  0x68   :  { %183 = vpow2.f32 %v126_v51  ;;  %v91_v0 = vrot.slane %v90_v60, 4 }
  0x69   :  { %v120_v1 = vrot.slane %v119_v61, 4 }
  0x6a   :  { %v92_v2 = vadd.f32 %v91_v0, %v90_v60 }
  0x6b   :  { %v121_v3 = vadd.f32 %v120_v1, %v119_v61 }
  0x6c   :  { %v93_v4 = vrot.slane %v92_v2, 2 }
  0x6d   :  { %v122_v5 = vrot.slane %v121_v3, 2 }
  0x6e   :  { %v94_v8 = vadd.f32 %v93_v4, %v92_v2 }
  0x6f   :  { %v123_v9 = vadd.f32 %v122_v5, %v121_v3 }
  0x70   :  { %v95_v12 = vrot.slane %v94_v8, 1 }
  0x71   :  { %v124_v13 = vrot.slane %v123_v9, 1 }
  0x72   :  { %v184_v55 = vpop.eup %183  ;;  %v96_v14 = vadd.f32 %v95_v12, %v94_v8 }
  0x73   :  { %v128_v59 = vsub.f32 1.5, %v184_v55  ;;  %v125_v15 = vadd.f32 %v124_v13, %v123_v9 }
  0x75   :  { %v129_v62 = vand.u32 2147483647, %v128_v59  ;;  %v136_v17 = vsub.f32 %v96_v14, %v125_v15 }
  0x77   :  { %v130_v63 = vmax.f32 %v129_v62, 1e-30 }
  0x79   :  { %185 = vlog2.f32 %v130_v63 }
  0x83   :  { %v186_v6 = vpop.eup %185 }
  0x84   :  { %v132_v7 = vmul.f32 0.6931472, %v186_v6 }
  0x86   :  { %v133_v10 = vmul.f32 0.9, %v132_v7 }
  0x88   :  { %v134_v11 = vmul.f32 1.442695, %v133_v10 }
  0x8a   :  { %187 = vpow2.f32 %v134_v11 }
  0x94   :  { %v188_v18 = vpop.eup %187 }
  0x95   :  { %v137_v19 = vadd.f32 %v188_v18, %v136_v17 }
  0x97   :  { %v145_v21 = vsel %vm144_vm3, %v137_v19, 0.0 }
  0x98   :  { %v147_v22 = vadd.f32 %v146_v20, %v145_v21 }
  0x9a   :  { %148 = vst [vmem:[#allocation5] sm:$0x1] %v147_v22 }
  0x9b   :  { %222 = shalt.err (!%p219_p12)
}
  0x9c   :  { %s223_s29 = scalar_lea.hbm %s295_s2, 16 }
  0x9d   :  { %p224_p13 = scmp.ne.s32.totalorder %s295_s2, %s223_s29  ;;  %p227_p0 = scmp.lt.u32.totalorder %s223_s29, %s295_s2 }
  0x9f   :  { %p229_p1 = pnand %p227_p0, %p224_p13 }
  0xa1   :  { %232 = shalt.err (!%p229_p1)
}
  0xa2   :  { %158 = dma.vmem_to_hbm [thread:$0]  %s156_s24, 16, %s295_s2, [#allocation4]  }
  0xa3   :  { %235 = dma.done.wait [#allocation4], 16  }
  0xa4   :  { %236 = vsyncadd [#allocation4], 4294967280 }
  0xa5   :  { %162 = vsyncpa [#allocation3], 1 }
  0xa6   :  { %163 = vsyncpa [#allocation4], 1 }

</bundles_post_ra>
